<compile_context>
chip_gen: v7x
topology: tpu7x:2x2x1
jax: 0.10.0
libtpu: 0.0.40
codegen_flags: <defaults>
</compile_context>

<pallas_src>
import functools

import jax
import jax.numpy as jnp
from jax.experimental import pallas as pl
from jax.experimental.pallas import tpu as pltpu


def _round_up(x, m):
    return ((x + m - 1) // m) * m


# --------------------------------------------------------------------------
# Kernel
# --------------------------------------------------------------------------
def _mgru_ode_kernel(h_ref, uz_ref, uh_ref, bz_ref, bh_ref, dh_ref, ht_ref):
    # Block shapes:
    #   h_ref            : (TB, L)    lane-dense slab of one weight group
    #   uz_ref / uh_ref  : (1, L, L)  block-diagonal group weight matrix
    #   bz_ref / bh_ref  : (1, L)
    h = h_ref[...]                          # (TB, L) float32
    uz = uz_ref[0]                          # (L, L)  float32 or bfloat16
    uh = uh_ref[0]
    bz = bz_ref[...]                        # (1, L) -> broadcasts over batch
    bh = bh_ref[...]

    w_dtype = uz.dtype
    pre_z = jnp.dot(h.astype(w_dtype), uz,
                    preferred_element_type=jnp.float32) + bz     # (TB, L)
    # sigmoid(x) == 0.5 * (tanh(0.5 * x) + 1): a single EUP transcendental.
    z = 0.5 * (jnp.tanh(0.5 * pre_z) + 1.0)
    zh = (z * h).astype(w_dtype)
    h_tilde = jnp.tanh(jnp.dot(zh, uh,
                               preferred_element_type=jnp.float32) + bh)
    dh = (1.0 - z) * (h_tilde - h)

    dh_ref[...] = dh.astype(dh_ref.dtype)
    ht_ref[...] = h_tilde.astype(ht_ref.dtype)


# --------------------------------------------------------------------------
# Host-side packing helpers
# --------------------------------------------------------------------------
def _packing_plan(input_size, n_dim):
    """Choose padded slice width n_pad and group size g so each group is
    exactly 128 lanes wide (or a multiple of 128 when n_dim > 128)."""
    if n_dim <= 128:
        n_pad = 1
        while n_pad < n_dim:        # smallest power of two >= n_dim; divides 128
            n_pad *= 2
        g = 128 // n_pad
    else:
        n_pad = _round_up(n_dim, 128)
        g = 1
    s_pad = _round_up(input_size, g)
    n_groups = s_pad // g
    lanes = g * n_pad               # lane width per grid step (capped at 128
    return n_pad, g, s_pad, n_groups, lanes   # unless n_dim itself is > 128)


def _block_diag_groups(U, s_pad, n_pad, n_groups, g):
    """(S, n, n) per-slice weights -> (n_groups, g*n_pad, g*n_pad) block-diag."""
    S, n, _ = U.shape
    Up = jnp.zeros((s_pad, n_pad, n_pad), dtype=U.dtype).at[:S, :n, :n].set(U)
    Ug = Up.reshape(n_groups, g, n_pad, n_pad)
    eye = jnp.eye(g, dtype=U.dtype)
    bd = jnp.einsum('sand,ab->sanbd', Ug, eye)      # block (a,b) = Ug[s,a] iff a==b
    return bd.reshape(n_groups, g * n_pad, g * n_pad)


def _pad_bias(b, s_pad, n_pad):
    S, n = b.shape
    bp = jnp.zeros((s_pad, n_pad), dtype=jnp.float32).at[:S, :n].set(b)
    return bp.reshape(1, s_pad * n_pad)


# --------------------------------------------------------------------------
# Public wrapper
# --------------------------------------------------------------------------
def mgn_mgru_ode_cell(t, mgn_h, U_z_c, U_h_c, b_z_c, b_h_c, *,
                      weights_dtype=jnp.float32):
    """Forward pass of mgn_mGRUODECell.

    t      : unused (signature parity with the PyTorch module)
    mgn_h  : (B, input_size * n_dim) float32
    U_z_c  : (input_size, n_dim, n_dim)
    U_h_c  : (input_size, n_dim, n_dim)
    b_z_c  : (input_size, n_dim)
    b_h_c  : (input_size, n_dim)
    returns (dh, h_tilde), each (B, input_size * n_dim)
    """
    del t
    B, D = mgn_h.shape
    S, n_dim, _ = U_z_c.shape
    assert D == S * n_dim

    n_pad, g, s_pad, n_groups, L = _packing_plan(S, n_dim)
    D_packed = n_groups * L

    # Pack per-slice weights into lane-dense block-diagonal group matrices
    # (tiny host/XLA-side work; in a real ODE loop this would be done once).
    uz_bd = _block_diag_groups(U_z_c, s_pad, n_pad, n_groups, g).astype(weights_dtype)
    uh_bd = _block_diag_groups(U_h_c, s_pad, n_pad, n_groups, g).astype(weights_dtype)
    bz = _pad_bias(b_z_c, s_pad, n_pad)
    bh = _pad_bias(b_h_c, s_pad, n_pad)

    # Batch tiling: one full-extent tile for modest B, otherwise 512-row tiles
    # (batch zero-padded up to a multiple of 512; rows are independent).
    if B <= 1024:
        TB = B
        B_pad = B
    else:
        TB = 512
        B_pad = _round_up(B, TB)
    n_btiles = B_pad // TB

    # Repack h (no-op pads/reshape are folded away by XLA for aligned shapes).
    h3 = mgn_h.reshape(B, S, n_dim)
    h3 = jnp.pad(h3, ((0, B_pad - B), (0, s_pad - S), (0, n_pad - n_dim)))
    h_packed = h3.reshape(B_pad, D_packed)

    # Batch axis innermost so group weights stay resident across batch tiles.
    grid = (n_groups, n_btiles)

    h_spec = pl.BlockSpec((TB, L), lambda gi, bi: (bi, gi))
    u_spec = pl.BlockSpec((1, L, L), lambda gi, bi: (gi, 0, 0))
    b_spec = pl.BlockSpec((1, L), lambda gi, bi: (0, gi))
    out_spec = pl.BlockSpec((TB, L), lambda gi, bi: (bi, gi))

    dh_p, ht_p = pl.pallas_call(
        _mgru_ode_kernel,
        out_shape=(
            jax.ShapeDtypeStruct((B_pad, D_packed), mgn_h.dtype),
            jax.ShapeDtypeStruct((B_pad, D_packed), mgn_h.dtype),
        ),
        grid=grid,
        in_specs=[h_spec, u_spec, u_spec, b_spec, b_spec],
        out_specs=(out_spec, out_spec),
        compiler_params=pltpu.CompilerParams(
            dimension_semantics=("parallel", "parallel"),
        ),
    )(h_packed, uz_bd, uh_bd, bz, bh)

    def unpack(y):
        y = y.reshape(B_pad, s_pad, n_pad)[:B, :S, :n_dim]
        return y.reshape(B, D)

    return unpack(dh_p), unpack(ht_p)


# --------------------------------------------------------------------------
# Reference + init (for the self-test)
# --------------------------------------------------------------------------
def _init_params(key, input_size, n_dim):
    """Deterministic init mirroring the module: orthogonal U, zero biases."""
    kz, kh = jax.random.split(key)

    def ortho_stack(k):
        mats = jax.random.normal(k, (input_size, n_dim, n_dim), dtype=jnp.float32)
        q, _ = jnp.linalg.qr(mats)
        return q.astype(jnp.float32)

    U_z_c = ortho_stack(kz)
    U_h_c = ortho_stack(kh)
    b_z_c = jnp.zeros((input_size, n_dim), dtype=jnp.float32)
    b_h_c = jnp.zeros((input_size, n_dim), dtype=jnp.float32)
    return U_z_c, U_h_c, b_z_c, b_h_c


def _reference(mgn_h, U_z_c, U_h_c, b_z_c, b_h_c):
    B = mgn_h.shape[0]
    input_size, n_dim, _ = U_z_c.shape
    h = mgn_h.reshape(B, input_size, n_dim)
    z = jax.nn.sigmoid(jnp.einsum('bij,ijk->bik', h, U_z_c) + b_z_c)
    h_tilde = jnp.tanh(jnp.einsum('bij,ijk->bik', z * h, U_h_c) + b_h_c)
    dh = (1.0 - z) * (h_tilde - h)
    return (dh.reshape(B, input_size * n_dim),
            h_tilde.reshape(B, input_size * n_dim))


def _check(batch, input_size, n_dim, key, *, weights_dtype=jnp.float32,
           atol=1e-5, rtol=1e-5):
    k_param, k_h = jax.random.split(key)
    U_z_c, U_h_c, b_z_c, b_h_c = _init_params(k_param, input_size, n_dim)
    mgn_h = jax.random.normal(k_h, (batch, input_size * n_dim), dtype=jnp.float32)
    t = jnp.float32(0.0)

    fn = jax.jit(functools.partial(mgn_mgru_ode_cell, weights_dtype=weights_dtype))
    dh, h_tilde = fn(t, mgn_h, U_z_c, U_h_c, b_z_c, b_h_c)
    jax.block_until_ready((dh, h_tilde))

    dh_ref, ht_ref = _reference(mgn_h, U_z_c, U_h_c, b_z_c, b_h_c)
    assert dh.shape == dh_ref.shape and h_tilde.shape == ht_ref.shape
    assert jnp.allclose(dh, dh_ref, atol=atol, rtol=rtol), (batch, input_size, n_dim)
    assert jnp.allclose(h_tilde, ht_ref, atol=atol, rtol=rtol), (batch, input_size, n_dim)


if __name__ == "__main__":
    key = jax.random.PRNGKey(0)
    keys = jax.random.split(key, 4)

    # Default module-sized case (single grid step, lane width 128).
    _check(batch=8, input_size=4, n_dim=32, key=keys[0])

    # Large, unaligned batch: exercises 512-row tiles + batch padding
    # (grid = (1, 3) -> >=2 parallel steps for v7x's two TensorCores).
    _check(batch=1037, input_size=4, n_dim=32, key=keys[1])

    # Awkward n_dim / input_size: exercises the zero-padding packing path
    # (n_dim 48 -> 64, group of 2 slices, input_size 3 -> 4).
    _check(batch=8, input_size=3, n_dim=48, key=keys[2])

    # Optional bf16-weights fast path (halved weight DMA, bf16-native MXU);
    # looser tolerance since weights are rounded to bfloat16.
    _check(batch=8, input_size=4, n_dim=32, key=keys[3],
           weights_dtype=jnp.bfloat16, atol=1e-1, rtol=1e-1)

    print("KERNEL_OK")
</pallas_src>

<mosaic_0001>
module attributes {stable_mosaic.version = 11 : i64} {
  func.func @_mgru_ode_kernel(%arg0: i32, %arg1: i32, %arg2: memref<8x128xf32, #tpu.memory_space<vmem>>, %arg3: memref<1x128x128xf32, #tpu.memory_space<vmem>>, %arg4: memref<1x128x128xf32, #tpu.memory_space<vmem>>, %arg5: memref<1x128xf32, #tpu.memory_space<vmem>>, %arg6: memref<1x128xf32, #tpu.memory_space<vmem>>, %arg7: memref<8x128xf32, #tpu.memory_space<vmem>>, %arg8: memref<8x128xf32, #tpu.memory_space<vmem>>) attributes {dimension_semantics = [#tpu.dimension_semantics<parallel>, #tpu.dimension_semantics<parallel>], iteration_bounds = array<i64: 1, 1>, scalar_prefetch = 0 : i64, scratch_operands = 0 : i64, tpu.core_type = #tpu.core_type<tc>, window_params = [{transform_indices = @transform_0, window_bounds = array<i64: 8, 128>}, {transform_indices = @transform_1, window_bounds = array<i64: 1, 128, 128>}, {transform_indices = @transform_2, window_bounds = array<i64: 1, 128, 128>}, {transform_indices = @transform_3, window_bounds = array<i64: 1, 128>}, {transform_indices = @transform_4, window_bounds = array<i64: 1, 128>}, {transform_indices = @transform_5, window_bounds = array<i64: 8, 128>}, {transform_indices = @transform_6, window_bounds = array<i64: 8, 128>}]} {
    %c0 = arith.constant 0 : index
    %c0_0 = arith.constant 0 : index
    %0 = vector.load %arg2[%c0, %c0_0] : memref<8x128xf32, #tpu.memory_space<vmem>>, vector<8x128xf32>
    %c0_1 = arith.constant 0 : index
    %c0_2 = arith.constant 0 : index
    %c0_3 = arith.constant 0 : index
    %1 = vector.load %arg3[%c0_1, %c0_2, %c0_3] : memref<1x128x128xf32, #tpu.memory_space<vmem>>, vector<1x128x128xf32>
    %2 = vector.shape_cast %1 : vector<1x128x128xf32> to vector<128x128xf32>
    %c0_4 = arith.constant 0 : index
    %c0_5 = arith.constant 0 : index
    %c0_6 = arith.constant 0 : index
    %3 = vector.load %arg4[%c0_4, %c0_5, %c0_6] : memref<1x128x128xf32, #tpu.memory_space<vmem>>, vector<1x128x128xf32>
    %4 = vector.shape_cast %3 : vector<1x128x128xf32> to vector<128x128xf32>
    %c0_7 = arith.constant 0 : index
    %c0_8 = arith.constant 0 : index
    %5 = vector.load %arg5[%c0_7, %c0_8] : memref<1x128xf32, #tpu.memory_space<vmem>>, vector<1x128xf32>
    %c0_9 = arith.constant 0 : index
    %c0_10 = arith.constant 0 : index
    %6 = vector.load %arg6[%c0_9, %c0_10] : memref<1x128xf32, #tpu.memory_space<vmem>>, vector<1x128xf32>
    %cst = arith.constant dense<0.000000e+00> : vector<8x128xf32>
    %7 = tpu.matmul %0, %2, %cst {dimension_numbers = #tpu.dot_dimension_numbers<[1], [0], [0], [1], [0, 0, 1, 1], [], []>} : vector<8x128xf32>, vector<128x128xf32>, vector<8x128xf32> -> vector<8x128xf32>
    %8 = vector.broadcast %5 : vector<1x128xf32> to vector<8x128xf32>
    %9 = arith.addf %7, %8 : vector<8x128xf32>
    %cst_11 = arith.constant 5.000000e-01 : f32
    %10 = vector.broadcast %cst_11 : f32 to vector<8x128xf32>
    %11 = arith.mulf %10, %9 : vector<8x128xf32>
    %12 = math.tanh %11 : vector<8x128xf32>
    %cst_12 = arith.constant 1.000000e+00 : f32
    %13 = vector.broadcast %cst_12 : f32 to vector<8x128xf32>
    %14 = arith.addf %12, %13 : vector<8x128xf32>
    %cst_13 = arith.constant 5.000000e-01 : f32
    %15 = vector.broadcast %cst_13 : f32 to vector<8x128xf32>
    %16 = arith.mulf %15, %14 : vector<8x128xf32>
    %17 = arith.mulf %16, %0 : vector<8x128xf32>
    %cst_14 = arith.constant dense<0.000000e+00> : vector<8x128xf32>
    %18 = tpu.matmul %17, %4, %cst_14 {dimension_numbers = #tpu.dot_dimension_numbers<[1], [0], [0], [1], [0, 0, 1, 1], [], []>} : vector<8x128xf32>, vector<128x128xf32>, vector<8x128xf32> -> vector<8x128xf32>
    %19 = vector.broadcast %6 : vector<1x128xf32> to vector<8x128xf32>
    %20 = arith.addf %18, %19 : vector<8x128xf32>
    %21 = math.tanh %20 : vector<8x128xf32>
    %cst_15 = arith.constant 1.000000e+00 : f32
    %22 = vector.broadcast %cst_15 : f32 to vector<8x128xf32>
    %23 = arith.subf %22, %16 : vector<8x128xf32>
    %24 = arith.subf %21, %0 : vector<8x128xf32>
    %25 = arith.mulf %23, %24 : vector<8x128xf32>
    %c0_16 = arith.constant 0 : index
    %c0_17 = arith.constant 0 : index
    %26 = vector.load %arg7[%c0_16, %c0_17] : memref<8x128xf32, #tpu.memory_space<vmem>>, vector<8x128xf32>
    tpu.vector_store %arg7[%c0_16, %c0_17], %25 {strides = array<i32>} : memref<8x128xf32, #tpu.memory_space<vmem>>, vector<8x128xf32>,
    %c0_18 = arith.constant 0 : index
    %c0_19 = arith.constant 0 : index
    %27 = vector.load %arg8[%c0_18, %c0_19] : memref<8x128xf32, #tpu.memory_space<vmem>>, vector<8x128xf32>
    tpu.vector_store %arg8[%c0_18, %c0_19], %21 {strides = array<i32>} : memref<8x128xf32, #tpu.memory_space<vmem>>, vector<8x128xf32>,
    return
  }
  func.func @transform_0(%arg0: i32, %arg1: i32) -> (i32, i32) {
    %c0_i32 = arith.constant 0 : i32
    return %arg1, %arg0 : i32, i32
  }
  func.func @transform_1(%arg0: i32, %arg1: i32) -> (i32, i32, i32) {
    %c0_i32 = arith.constant 0 : i32
    %c0_i32_0 = arith.constant 0 : i32
    %c0_i32_1 = arith.constant 0 : i32
    return %arg0, %c0_i32, %c0_i32_0 : i32, i32, i32
  }
  func.func @transform_2(%arg0: i32, %arg1: i32) -> (i32, i32, i32) {
    %c0_i32 = arith.constant 0 : i32
    %c0_i32_0 = arith.constant 0 : i32
    %c0_i32_1 = arith.constant 0 : i32
    return %arg0, %c0_i32, %c0_i32_0 : i32, i32, i32
  }
  func.func @transform_3(%arg0: i32, %arg1: i32) -> (i32, i32) {
    %c0_i32 = arith.constant 0 : i32
    %c0_i32_0 = arith.constant 0 : i32
    return %c0_i32, %arg0 : i32, i32
  }
  func.func @transform_4(%arg0: i32, %arg1: i32) -> (i32, i32) {
    %c0_i32 = arith.constant 0 : i32
    %c0_i32_0 = arith.constant 0 : i32
    return %c0_i32, %arg0 : i32, i32
  }
  func.func @transform_5(%arg0: i32, %arg1: i32) -> (i32, i32) {
    %c0_i32 = arith.constant 0 : i32
    return %arg1, %arg0 : i32, i32
  }
  func.func @transform_6(%arg0: i32, %arg1: i32) -> (i32, i32) {
    %c0_i32 = arith.constant 0 : i32
    return %arg1, %arg0 : i32, i32
  }
}

</mosaic_0001>

<bundles_post_ra>
// kernel: mgn_mgru_ode_cell.1
= control target key start
LH: loop header
LB: loop body
LE: loop exit
PB: predicated region body
PF: predicated region fallthrough
CT: control target
= control target key end

     0   :  { %12 = vsyncpa [#allocation3], 0  ;;  %v461_v3 = vmov 0.0|0.0   ;;  %vm462_vm0 = vmmov 0   ;;  %v463_v6 = vmov 0.0   ;;  %s651_s0 = inlined_call_operand.vmem [shape: f32[8,128], index: 0, kind: input, shape index: {}]   ;;  %s652_s1 = inlined_call_operand.vmem [shape: f32[1,128,128], index: 1, kind: input, shape index: {}]   ;;  %s653_s2 = inlined_call_operand.vmem [shape: f32[1,128,128], index: 2, kind: input, shape index: {}]   ;;  %s654_s3 = inlined_call_operand.vmem [shape: f32[1,128], index: 3, kind: input, shape index: {}]   ;;  %s655_s4 = inlined_call_operand.vmem [shape: f32[1,128], index: 4, kind: input, shape index: {}]   ;;  %s656_s5 = inlined_call_operand.hbm [shape: f32[8,128], index: 5, kind: output, shape index: {0}]   ;;  %s657_s6 = inlined_call_operand.hbm [shape: f32[8,128], index: 6, kind: output, shape index: {1}]  }
   0x1   :  { %v25_v0 = vld [vmem:[%s652_s1] sm:$0xff]  ;;  %v26_v1 = vld [vmem:[%s652_s1 + $0x8] sm:$0xff]  ;;  %v27_v2 = vld [vmem:[%s652_s1 + $0x10] sm:$0xff]  ;;  %356 = vmatprep.subr.bf16.mxu0 %v461_v3  ;;  %318 = vmatprep.mubr.msk.f32.mxu0 %vm462_vm0, %v463_v6 }
   0x2   :  { %v357_v4 = vpack.c.bf16 %v26_v1, %v25_v0  ;;  %v28_v5 = vld [vmem:[%s652_s1 + $0x18] sm:$0xff]  ;;  %380 = vmatprep.subr.bf16.mxu1 %v461_v3  ;;  %353 = vmatprep.mubr.msk.f32.mxu1 %vm462_vm0, %v463_v6  ;;  %v29_v8 = vld [vmem:[%s652_s1 + $0x20] sm:$0xff]  ;;  %v30_v9 = vld [vmem:[%s652_s1 + $0x28] sm:$0xff] }
   0x3   :  { %v360_v7 = vpack.c.bf16 %v28_v5, %v27_v2  ;;  %v41_v10 = vld [vmem:[%s653_s2] sm:$0xff]  ;;  %v42_v11 = vld [vmem:[%s653_s2 + $0x8] sm:$0xff]  ;;  %v43_v12 = vld [vmem:[%s653_s2 + $0x10] sm:$0xff]  ;;  %v363_v14 = vpack.c.bf16 %v30_v9, %v29_v8 }
   0x4   :  { %358 = vmatpush3.bf16.msra.mxu0 %v357_v4  ;;  %v44_v13 = vld [vmem:[%s653_s2 + $0x18] sm:$0xff]  ;;  %v381_v15 = vpack.c.bf16 %v42_v11, %v41_v10  ;;  %v31_v16 = vld [vmem:[%s652_s1 + $0x30] sm:$0xff] }
   0x5   :  { %359 = vmatprep.subr.bf16.mxu0 %v461_v3  ;;  %v32_v17 = vld [vmem:[%s652_s1 + $0x38] sm:$0xff] }
   0x8   :  { %361 = vmatpush3.bf16.msra.mxu0 %v360_v7 }
   0x9   :  { %362 = vmatprep.subr.bf16.mxu0 %v461_v3 }
   0xa   :  { %13 = vsyncpa [#allocation5], 0  ;;  %382 = vmatpush3.bf16.msra.mxu1 %v381_v15  ;;  %v384_v18 = vpack.c.bf16 %v44_v13, %v43_v12  ;;  %v45_v19 = vld [vmem:[%s653_s2 + $0x20] sm:$0xff]  ;;  %v46_v20 = vld [vmem:[%s653_s2 + $0x28] sm:$0xff]  ;;  %v366_v21 = vpack.c.bf16 %v32_v17, %v31_v16  ;;  %s465_s17 = smov [#allocation2]  }
   0xb   :  { %383 = vmatprep.subr.bf16.mxu1 %v461_v3  ;;  %v33_v22 = vld [vmem:[%s652_s1 + $0x40] sm:$0xff]  ;;  %v34_v23 = vld [vmem:[%s652_s1 + $0x48] sm:$0xff]  ;;  %v387_v24 = vpack.c.bf16 %v46_v20, %v45_v19  ;;  %v35_v26 = vld [vmem:[%s652_s1 + $0x50] sm:$0xff]  ;;  %s228_s18 = sshll.u32 %s465_s17, 4  ;;  %s229_s18 = int_to_ptr.vmem [resolvable:$true] %s228_s18 }
   0xc   :  { %364 = vmatpush3.bf16.msra.mxu0 %v363_v14  ;;  %v369_v25 = vpack.c.bf16 %v34_v23, %v33_v22  ;;  %v36_v27 = vld [vmem:[%s652_s1 + $0x58] sm:$0xff]  ;;  %v37_v29 = vld [vmem:[%s652_s1 + $0x60] sm:$0xff]  ;;  %v38_v30 = vld [vmem:[%s652_s1 + $0x68] sm:$0xff] }
   0xd   :  { %365 = vmatprep.subr.bf16.mxu0 %v461_v3  ;;  %v372_v28 = vpack.c.bf16 %v36_v27, %v35_v26  ;;  %v375_v31 = vpack.c.bf16 %v38_v30, %v37_v29  ;;  %v39_v32 = vld [vmem:[%s652_s1 + $0x70] sm:$0xff]  ;;  %v40_v33 = vld [vmem:[%s652_s1 + $0x78] sm:$0xff]  ;;  %v582_v35 = vld [vmem:[%s651_s0] sm:$0xff] }
   0xe   :  { %385 = vmatpush3.bf16.msra.mxu1 %v384_v18  ;;  %v378_v34 = vpack.c.bf16 %v40_v33, %v39_v32  ;;  %v47_v36 = vld [vmem:[%s653_s2 + $0x30] sm:$0xff]  ;;  %v48_v37 = vld [vmem:[%s653_s2 + $0x38] sm:$0xff]  ;;  %v49_v39 = vld [vmem:[%s653_s2 + $0x40] sm:$0xff] }
   0xf   :  { %386 = vmatprep.subr.bf16.mxu1 %v461_v3  ;;  %v390_v38 = vpack.c.bf16 %v48_v37, %v47_v36  ;;  %v50_v40 = vld [vmem:[%s653_s2 + $0x48] sm:$0xff]  ;;  %v51_v42 = vld [vmem:[%s653_s2 + $0x50] sm:$0xff]  ;;  %v52_v43 = vld [vmem:[%s653_s2 + $0x58] sm:$0xff] }
  0x10   :  { %367 = vmatpush3.bf16.msra.mxu0 %v366_v21  ;;  %v393_v41 = vpack.c.bf16 %v50_v40, %v49_v39  ;;  %v396_v44 = vpack.c.bf16 %v52_v43, %v51_v42  ;;  %v53_v45 = vld [vmem:[%s653_s2 + $0x60] sm:$0xff]  ;;  %v54_v46 = vld [vmem:[%s653_s2 + $0x68] sm:$0xff]  ;;  %v55_v48 = vld [vmem:[%s653_s2 + $0x70] sm:$0xff] }
  0x11   :  { %368 = vmatprep.subr.bf16.mxu0 %v461_v3  ;;  %v399_v47 = vpack.c.bf16 %v54_v46, %v53_v45  ;;  %v56_v49 = vld [vmem:[%s653_s2 + $0x78] sm:$0xff]  ;;  %v250_v51 = vld [vmem:[%s654_s3] ss:$0 sm:$0xff]  ;;  %s464_s2 = smov [#allocation4]  }
  0x12   :  { %388 = vmatpush3.bf16.msra.mxu1 %v387_v24  ;;  %v402_v50 = vpack.c.bf16 %v56_v49, %v55_v48  ;;  %v251_v60 = vld [vmem:[%s655_s4] ss:$0 sm:$0xff]  ;;  %s238_s3 = sshll.u32 %s464_s2, 4  ;;  %s239_s3 = int_to_ptr.vmem [resolvable:$true] %s238_s3 }
  0x13   :  { %389 = vmatprep.subr.bf16.mxu1 %v461_v3  ;;  %s413_s19 = scalar_lea.vmem %s239_s3, 128  ;;  %p418_p1 = scmp.lt.s32.totalorder %s239_s3, %s239_s3 }
  0x14   :  { %370 = vmatpush3.bf16.msra.mxu0 %v369_v25  ;;  %p414_p0 = scmp.ne.s32.totalorder %s239_s3, %s413_s19  ;;  %p419_p2 = scmp.lt.s32.totalorder %s413_s19, %s413_s19 }
  0x15   :  { %371 = vmatprep.subr.bf16.mxu0 %v461_v3 }
  0x16   :  { %391 = vmatpush3.bf16.msra.mxu1 %v390_v38  ;;  %p420_p3 = por %p419_p2, %p418_p1 }
  0x17   :  { %392 = vmatprep.subr.bf16.mxu1 %v461_v3 }
  0x18   :  { %373 = vmatpush3.bf16.msra.mxu0 %v372_v28  ;;  %p421_p4 = pnand %p420_p3, %p414_p0 }
  0x19   :  { %374 = vmatprep.subr.bf16.mxu0 %v461_v3 }
  0x1a   :  { %394 = vmatpush3.bf16.msra.mxu1 %v393_v41 }
  0x1b   :  { %395 = vmatprep.subr.bf16.mxu1 %v461_v3 }
  0x1c   :  { %376 = vmatpush3.bf16.msra.mxu0 %v375_v31 }
  0x1d   :  { %377 = vmatprep.subr.bf16.mxu0 %v461_v3 }
  0x1e   :  { %397 = vmatpush3.bf16.msra.mxu1 %v396_v44 }
  0x1f   :  { %398 = vmatprep.subr.bf16.mxu1 %v461_v3 }
  0x20   :  { %379 = vmatpush3.bf16.msra.mxu0 %v378_v34 }
  0x22   :  { %400 = vmatpush3.bf16.msra.mxu1 %v399_v47 }
  0x23   :  { %319 = vmatmul.mubr.f32.vlgmr.msra.gmra.mrb[0].mxu0 %v582_v35  ;;  %401 = vmatprep.subr.bf16.mxu1 %v461_v3 }
  0x26   :  { %403 = vmatpush3.bf16.msra.mxu1 %v402_v50 }
  0xf6   :  { %v131_v52 = vpop.f32.mrb[0].mxu0 }
  0xf7   :  { %v132_v53 = vadd.f32 %v250_v51, %v131_v52  ;;  %v320_v54 = vpop.f32.mrb[1].mxu0 }
  0xf9   :  { %v135_v55 = vmul.f32 0.5, %v132_v53 }
  0xfb   :  { %409 = vtanh.f32 %v135_v55 }
 0x105   :  { %v410_v56 = vpop.eup %409 }
 0x106   :  { %v137_v57 = vadd.f32 1.0, %v410_v56 }
 0x108   :  { %v138_v58 = vmul.f32 0.5, %v137_v57 }
 0x10a   :  { %v139_v59 = vmul.f32 %v138_v58, %v582_v35  ;;  %v217_v1 = vsub.f32 1.0, %v138_v58 }
 0x10c   :  { %354 = vmatmul.mubr.f32.vlgmr.msra.gmra.mrb[0].mxu1 %v139_v59 }
 0x1df   :  { %v212_v61 = vpop.f32.mrb[0].mxu1 }
 0x1e0   :  { %v213_v62 = vadd.f32 %v251_v60, %v212_v61  ;;  %v355_v63 = vpop.f32.mrb[1].mxu1 }
 0x1e2   :  { %411 = vtanh.f32 %v213_v62 }
 0x1ec   :  { %v412_v0 = vpop.eup %411 }
 0x1ed   :  { %221 = vst [vmem:[#allocation4] sm:$0xff] %v412_v0  ;;  %v218_v2 = vsub.f32 %v412_v0, %v582_v35 }
 0x1ee   :  { %424 = shalt.err (!%p421_p4)
}
 0x1ef   :  { %s425_s21 = scalar_lea.hbm %s657_s6, 128 }
 0x1f0   :  { %p426_p5 = scmp.ne.s32.totalorder %s657_s6, %s425_s21  ;;  %p429_p6 = scmp.lt.u32.totalorder %s425_s21, %s657_s6 }
 0x1f2   :  { %p431_p7 = pnand %p429_p6, %p426_p5 }
 0x1f4   :  { %434 = shalt.err (!%p431_p7)
}
 0x1f5   :  { %241 = dma.vmem_to_hbm [thread:$0]  %s239_s3, 128, %s657_s6, [#allocation5]   ;;  %v219_v3 = vmul.f32 %v218_v2, %v217_v1 }
 0x1f6   :  { %s435_s26 = scalar_lea.vmem %s229_s18, 128  ;;  %p440_p9 = scmp.lt.s32.totalorder %s229_s18, %s229_s18 }
 0x1f7   :  { %220 = vst [vmem:[#allocation2] sm:$0xff] %v219_v3  ;;  %p436_p8 = scmp.ne.s32.totalorder %s229_s18, %s435_s26  ;;  %p441_p10 = scmp.lt.s32.totalorder %s435_s26, %s435_s26 }
 0x1f9   :  { %p442_p11 = por %p441_p10, %p440_p9 }
 0x1fb   :  { %p443_p12 = pnand %p442_p11, %p436_p8 }
 0x1fd   :  { %446 = shalt.err (!%p443_p12)
}
 0x1fe   :  { %s447_s29 = scalar_lea.hbm %s656_s5, 128 }
 0x1ff   :  { %p448_p13 = scmp.ne.s32.totalorder %s656_s5, %s447_s29  ;;  %p451_p0 = scmp.lt.u32.totalorder %s447_s29, %s656_s5 }
 0x201   :  { %p453_p1 = pnand %p451_p0, %p448_p13 }
 0x203   :  { %456 = shalt.err (!%p453_p1)
}
 0x204   :  { %231 = dma.vmem_to_hbm [thread:$0]  %s229_s18, 128, %s656_s5, [#allocation3]  }
 0x205   :  { %457 = dma.done.wait [#allocation3], 128  }
 0x206   :  { %458 = vsyncadd [#allocation3], 4294967168 }
 0x207   :  { %459 = dma.done.wait [#allocation5], 128  }
 0x208   :  { %460 = vsyncadd [#allocation5], 4294967168 }
 0x209   :  { %248 = vsyncpa [#allocation3], 1 }
 0x20a   :  { %249 = vsyncpa [#allocation5], 1 }

</bundles_post_ra>
